<compile_context>
chip_gen: v7x
topology: tpu7x:2x2x1
jax: 0.10.0
libtpu: 0.0.40
codegen_flags: <defaults>
</compile_context>

<pallas_src>
import numpy as np
import jax
import jax.numpy as jnp
from jax.experimental import pallas as pl
from jax.experimental.pallas import tpu as pltpu

SEQ = 3              # sequence length implied by the .view(3, 1, 4)
FEAT = 4             # LSTM input size
HID = 4              # LSTM hidden size
KDIM = 8             # MXU contraction dim (features 0..3 real, rows 4..7 zero)
GSTRIDE = 8          # lanes per gate block (units 0..3 real, lanes 4..7 zero)
NGATES = 4           # i, f, o, g (repacked order)
GCOLS = NGATES * GSTRIDE          # 32 gate columns -> everything in one vreg
PACK_ROWS = 2 * KDIM + 8          # 24 rows: W_ih^T | W_hh^T | bias | zero pad
GATE_PERM = (0, 1, 3, 2)          # packed (i, f, o, g) <- PyTorch (i, f, g, o)


# ----------------------------------------------------------------------------
# Kernel
#   img_ref: (B, C, H, W) f32 image in VMEM (needs B>=1, C>=3, H>=1, W>=8)
#   w_ref  : (24, 32) packed params:
#              rows 0..7   W_ih^T  (rows 4..7 zero)
#              rows 8..15  W_hh^T  (rows 4..7 zero)
#              row  16     b_ih + b_hh
#   out_ref: (3, 4) f32 -- the LSTM output sequence (h_1, h_2, h_3)
# ----------------------------------------------------------------------------
def lstm_kernel(img_ref, w_ref, out_ref):
    # Fused input gather: a[t] = image[0, t, 0, 0:4].  We read 8 lanes so the
    # contraction dim is KDIM=8 with no in-kernel zero-padding: lanes 4..7 are
    # stray image pixels that only ever hit zero weight rows and are sliced
    # away before the output store, so they never affect valid results.
    r0 = img_ref[0, 0, 0:1, 0:KDIM]          # (1, 8)  x_0  (== h0, module's b[0:1])
    r1 = img_ref[0, 1, 0:1, 0:KDIM]          # (1, 8)  x_1  (== c0, module's b[1:2])
    r2 = img_ref[0, 2, 0:1, 0:KDIM]          # (1, 8)  x_2
    xs = jnp.concatenate([r0, r1, r2], axis=0)                     # (3, 8)

    wih = w_ref[0:KDIM, :]                    # (8, 32)  W_ih^T blocks
    whh = w_ref[KDIM:2 * KDIM, :]             # (8, 32)  W_hh^T blocks
    bias = w_ref[2 * KDIM:2 * KDIM + 1, :]    # (1, 32)  b_ih + b_hh

    # Hoisted input projection + bias for ALL timesteps: one MXU pass + one
    # VPU add, entirely off the serial recurrence path.
    xg = jnp.dot(xs, wih, preferred_element_type=jnp.float32) + bias   # (3,32)

    h = r0          # initial hidden (lanes 0..3 valid)
    c = r1          # initial cell   (lanes 0..3 valid)
    outs = []
    # Tiny static trip count -> fully unrolled; only one dependent MXU dot per
    # step is loop-carried.  At t=0 the dot depends only on h0, so it can be
    # scheduled alongside the hoisted xg dot.
    for t in range(SEQ):
        rec = jnp.dot(h, whh, preferred_element_type=jnp.float32)      # (1,32)
        gates = xg[t:t + 1, :] + rec                                   # (1,32)
        # (i, f, o, g) packing: one sigmoid over the contiguous i|f|o slab,
        # one tanh over g, one tanh over c  ->  3 EUP regions per step.
        sfo = jax.nn.sigmoid(gates[:, 0:3 * GSTRIDE])                  # (1,24)
        g_g = jnp.tanh(gates[:, 3 * GSTRIDE:4 * GSTRIDE])              # (1, 8)
        i_g = sfo[:, 0:GSTRIDE]
        f_g = sfo[:, GSTRIDE:2 * GSTRIDE]
        o_g = sfo[:, 2 * GSTRIDE:3 * GSTRIDE]
        # Padded lanes 4..7: weight columns/bias there are zero -> preact 0 ->
        # sigmoid 0.5 / tanh 0; those lanes of c/h stay finite, feed only zero
        # weight rows next step and are sliced off below.  Harmless.
        c = f_g * c + i_g * g_g
        h = o_g * jnp.tanh(c)
        outs.append(h[:, 0:HID])                                       # (1, 4)
    # Single store of the whole result tile (no zero-init, no per-row writes).
    out_ref[...] = jnp.concatenate(outs, axis=0)                       # (3, 4)


def _lstm_pallas(image, w_packed):
    vmem = pl.BlockSpec(memory_space=pltpu.MemorySpace.VMEM)
    flops = 2 * SEQ * KDIM * GCOLS + SEQ * (2 * KDIM * GCOLS + 8 * GCOLS)
    byts = 4 * (image.size + w_packed.size + SEQ * HID)
    return pl.pallas_call(
        lstm_kernel,
        out_shape=jax.ShapeDtypeStruct((SEQ, HID), jnp.float32),
        in_specs=[vmem, vmem],
        out_specs=vmem,
        cost_estimate=pl.CostEstimate(flops=flops,
                                      transcendentals=SEQ * 5 * GSTRIDE,
                                      bytes_accessed=byts),
    )(image, w_packed)


# ----------------------------------------------------------------------------
# Parameter packing: done ONCE per parameter set (host-side NumPy), reused.
# ----------------------------------------------------------------------------
def pack_lstm_params(w_ih, w_hh, b_ih, b_hh):
    w_ih = np.asarray(w_ih, np.float32)       # (4*HID, FEAT), PyTorch layout
    w_hh = np.asarray(w_hh, np.float32)       # (4*HID, HID)
    bias = np.asarray(b_ih, np.float32) + np.asarray(b_hh, np.float32)
    w = np.zeros((PACK_ROWS, GCOLS), np.float32)
    for p, pt in enumerate(GATE_PERM):        # p: packed block, pt: torch chunk
        col = p * GSTRIDE
        rows = slice(pt * HID, (pt + 1) * HID)
        w[0:FEAT, col:col + HID] = w_ih[rows, :].T           # W_ih^T block
        w[KDIM:KDIM + HID, col:col + HID] = w_hh[rows, :].T  # W_hh^T block
        w[2 * KDIM, col:col + HID] = bias[rows]              # bias row
    return jnp.asarray(w)


# ----------------------------------------------------------------------------
# Module0.forward equivalent (weights passed pre-packed).
# All slicing/reshaping of the image happens inside the kernel.
# ----------------------------------------------------------------------------
@jax.jit
def module0_forward(inputs, w_packed):
    image0 = inputs[0].astype(jnp.float32)       # no-op when already f32
    out = _lstm_pallas(image0, w_packed)         # (3, 4)
    return out.reshape(SEQ, 1, HID)              # == x[0] of nn.LSTM (bitcast)


# Pure-JAX reference (PyTorch LSTM semantics) for a correctness check.
def lstm_ref(a, h0, c0, w_ih, w_hh, b_ih, b_hh):
    h = h0.reshape(1, HID)
    c = c0.reshape(1, HID)
    outs = []
    for t in range(a.shape[0]):
        x_t = a[t].reshape(1, FEAT)
        gates = x_t @ w_ih.T + h @ w_hh.T + b_ih + b_hh
        i = jax.nn.sigmoid(gates[:, 0:HID])
        f = jax.nn.sigmoid(gates[:, HID:2 * HID])
        g = jnp.tanh(gates[:, 2 * HID:3 * HID])
        o = jax.nn.sigmoid(gates[:, 3 * HID:4 * HID])
        c = f * c + i * g
        h = o * jnp.tanh(c)
        outs.append(h)
    return jnp.stack(outs)                        # (SEQ, 1, HID)


if __name__ == "__main__":
    key = jax.random.PRNGKey(0)
    k_img, k1, k2, k3, k4 = jax.random.split(key, 5)

    # Deterministic "CIFAR-like" input: NCHW, batch=2, channels=3, 16x16.
    image0 = jax.random.normal(k_img, (2, 3, 16, 16), dtype=jnp.float32)
    inputs = (image0,)

    # Deterministic LSTM(4, 4, 1) params, PyTorch-style U(-1/sqrt(H), 1/sqrt(H)).
    bound = 1.0 / np.sqrt(HID)
    w_ih = jax.random.uniform(k1, (4 * HID, FEAT), jnp.float32, -bound, bound)
    w_hh = jax.random.uniform(k2, (4 * HID, HID), jnp.float32, -bound, bound)
    b_ih = jax.random.uniform(k3, (4 * HID,), jnp.float32, -bound, bound)
    b_hh = jax.random.uniform(k4, (4 * HID,), jnp.float32, -bound, bound)

    # Pack weights once per parameter set (cached across forward calls).
    w_packed = pack_lstm_params(w_ih, w_hh, b_ih, b_hh)

    out = module0_forward(inputs, w_packed)
    out = jax.block_until_ready(out)

    # Verify against a pure-JAX LSTM reference with identical slicing:
    # a = image0[0:1][:, :, 0:1, 0:4].view(3,1,4);  h0 = a[0], c0 = a[1].
    a = image0[0, 0:3, 0, 0:4].reshape(SEQ, 1, FEAT)
    h0 = a[0].reshape(1, 1, HID)
    c0 = a[1].reshape(1, 1, HID)
    ref = lstm_ref(a, h0, c0, w_ih, w_hh, b_ih, b_hh)
    assert out.shape == (3, 1, 4), out.shape
    assert np.allclose(np.asarray(out), np.asarray(ref), atol=1e-5), \
        (np.asarray(out), np.asarray(ref))

    print("KERNEL_OK")
</pallas_src>

<mosaic_0001>
module attributes {stable_mosaic.version = 11 : i64} {
  func.func @lstm_kernel(%arg0: memref<2x3x16x16xf32, #tpu.memory_space<vmem>>, %arg1: memref<24x32xf32, #tpu.memory_space<vmem>>, %arg2: memref<3x4xf32, #tpu.memory_space<vmem>>) attributes {dimension_semantics = [], scalar_prefetch = 0 : i64, scratch_operands = 0 : i64, tpu.core_type = #tpu.core_type<tc>} {
    %c0 = arith.constant 0 : index
    %c0_0 = arith.constant 0 : index
    %c0_1 = arith.constant 0 : index
    %c0_2 = arith.constant 0 : index
    %0 = vector.load %arg0[%c0, %c0_0, %c0_1, %c0_2] : memref<2x3x16x16xf32, #tpu.memory_space<vmem>>, vector<1x1x1x8xf32>
    %1 = vector.shape_cast %0 : vector<1x1x1x8xf32> to vector<1x8xf32>
    %c0_3 = arith.constant 0 : index
    %c1 = arith.constant 1 : index
    %c0_4 = arith.constant 0 : index
    %c0_5 = arith.constant 0 : index
    %2 = vector.load %arg0[%c0_3, %c1, %c0_4, %c0_5] : memref<2x3x16x16xf32, #tpu.memory_space<vmem>>, vector<1x1x1x8xf32>
    %3 = vector.shape_cast %2 : vector<1x1x1x8xf32> to vector<1x8xf32>
    %c0_6 = arith.constant 0 : index
    %c2 = arith.constant 2 : index
    %c0_7 = arith.constant 0 : index
    %c0_8 = arith.constant 0 : index
    %4 = vector.load %arg0[%c0_6, %c2, %c0_7, %c0_8] : memref<2x3x16x16xf32, #tpu.memory_space<vmem>>, vector<1x1x1x8xf32>
    %5 = vector.shape_cast %4 : vector<1x1x1x8xf32> to vector<1x8xf32>
    %6 = tpu.concatenate %1, %3, %5 in 0 : vector<1x8xf32>, vector<1x8xf32>, vector<1x8xf32> -> vector<3x8xf32>
    %c0_9 = arith.constant 0 : index
    %c0_10 = arith.constant 0 : index
    %7 = vector.load %arg1[%c0_9, %c0_10] : memref<24x32xf32, #tpu.memory_space<vmem>>, vector<8x32xf32>
    %c8 = arith.constant 8 : index
    %c0_11 = arith.constant 0 : index
    %8 = vector.load %arg1[%c8, %c0_11] : memref<24x32xf32, #tpu.memory_space<vmem>>, vector<8x32xf32>
    %c16 = arith.constant 16 : index
    %c0_12 = arith.constant 0 : index
    %9 = vector.load %arg1[%c16, %c0_12] : memref<24x32xf32, #tpu.memory_space<vmem>>, vector<1x32xf32>
    %cst = arith.constant dense<0.000000e+00> : vector<3x32xf32>
    %10 = tpu.matmul %6, %7, %cst {dimension_numbers = #tpu.dot_dimension_numbers<[1], [0], [0], [1], [0, 0, 1, 1], [], []>} : vector<3x8xf32>, vector<8x32xf32>, vector<3x32xf32> -> vector<3x32xf32>
    %11 = vector.broadcast %9 : vector<1x32xf32> to vector<3x32xf32>
    %12 = arith.addf %10, %11 : vector<3x32xf32>
    %cst_13 = arith.constant dense<0.000000e+00> : vector<1x32xf32>
    %13 = tpu.matmul %1, %8, %cst_13 {dimension_numbers = #tpu.dot_dimension_numbers<[1], [0], [0], [1], [0, 0, 1, 1], [], []>} : vector<1x8xf32>, vector<8x32xf32>, vector<1x32xf32> -> vector<1x32xf32>
    %14 = vector.extract_strided_slice %12 {offsets = [0, 0], sizes = [1, 32], strides = [1, 1]} : vector<3x32xf32> to vector<1x32xf32>
    %15 = arith.addf %14, %13 : vector<1x32xf32>
    %16 = vector.extract_strided_slice %15 {offsets = [0, 0], sizes = [1, 24], strides = [1, 1]} : vector<1x32xf32> to vector<1x24xf32>
    %17 = arith.negf %16 : vector<1x24xf32>
    %18 = math.exp %17 : vector<1x24xf32>
    %cst_14 = arith.constant 1.000000e+00 : f32
    %19 = vector.broadcast %cst_14 : f32 to vector<1x24xf32>
    %20 = arith.addf %19, %18 : vector<1x24xf32>
    %21 = arith.divf %19, %20 : vector<1x24xf32>
    %22 = vector.extract_strided_slice %15 {offsets = [0, 24], sizes = [1, 8], strides = [1, 1]} : vector<1x32xf32> to vector<1x8xf32>
    %23 = math.tanh %22 : vector<1x8xf32>
    %24 = vector.extract_strided_slice %21 {offsets = [0, 0], sizes = [1, 8], strides = [1, 1]} : vector<1x24xf32> to vector<1x8xf32>
    %25 = vector.extract_strided_slice %21 {offsets = [0, 8], sizes = [1, 8], strides = [1, 1]} : vector<1x24xf32> to vector<1x8xf32>
    %26 = vector.extract_strided_slice %21 {offsets = [0, 16], sizes = [1, 8], strides = [1, 1]} : vector<1x24xf32> to vector<1x8xf32>
    %27 = arith.mulf %25, %3 : vector<1x8xf32>
    %28 = arith.mulf %24, %23 : vector<1x8xf32>
    %29 = arith.addf %27, %28 : vector<1x8xf32>
    %30 = math.tanh %29 : vector<1x8xf32>
    %31 = arith.mulf %26, %30 : vector<1x8xf32>
    %32 = vector.extract_strided_slice %31 {offsets = [0, 0], sizes = [1, 4], strides = [1, 1]} : vector<1x8xf32> to vector<1x4xf32>
    %cst_15 = arith.constant dense<0.000000e+00> : vector<1x32xf32>
    %33 = tpu.matmul %31, %8, %cst_15 {dimension_numbers = #tpu.dot_dimension_numbers<[1], [0], [0], [1], [0, 0, 1, 1], [], []>} : vector<1x8xf32>, vector<8x32xf32>, vector<1x32xf32> -> vector<1x32xf32>
    %34 = vector.extract_strided_slice %12 {offsets = [1, 0], sizes = [1, 32], strides = [1, 1]} : vector<3x32xf32> to vector<1x32xf32>
    %35 = arith.addf %34, %33 : vector<1x32xf32>
    %36 = vector.extract_strided_slice %35 {offsets = [0, 0], sizes = [1, 24], strides = [1, 1]} : vector<1x32xf32> to vector<1x24xf32>
    %37 = arith.negf %36 : vector<1x24xf32>
    %38 = math.exp %37 : vector<1x24xf32>
    %cst_16 = arith.constant 1.000000e+00 : f32
    %39 = vector.broadcast %cst_16 : f32 to vector<1x24xf32>
    %40 = arith.addf %39, %38 : vector<1x24xf32>
    %41 = arith.divf %39, %40 : vector<1x24xf32>
    %42 = vector.extract_strided_slice %35 {offsets = [0, 24], sizes = [1, 8], strides = [1, 1]} : vector<1x32xf32> to vector<1x8xf32>
    %43 = math.tanh %42 : vector<1x8xf32>
    %44 = vector.extract_strided_slice %41 {offsets = [0, 0], sizes = [1, 8], strides = [1, 1]} : vector<1x24xf32> to vector<1x8xf32>
    %45 = vector.extract_strided_slice %41 {offsets = [0, 8], sizes = [1, 8], strides = [1, 1]} : vector<1x24xf32> to vector<1x8xf32>
    %46 = vector.extract_strided_slice %41 {offsets = [0, 16], sizes = [1, 8], strides = [1, 1]} : vector<1x24xf32> to vector<1x8xf32>
    %47 = arith.mulf %45, %29 : vector<1x8xf32>
    %48 = arith.mulf %44, %43 : vector<1x8xf32>
    %49 = arith.addf %47, %48 : vector<1x8xf32>
    %50 = math.tanh %49 : vector<1x8xf32>
    %51 = arith.mulf %46, %50 : vector<1x8xf32>
    %52 = vector.extract_strided_slice %51 {offsets = [0, 0], sizes = [1, 4], strides = [1, 1]} : vector<1x8xf32> to vector<1x4xf32>
    %cst_17 = arith.constant dense<0.000000e+00> : vector<1x32xf32>
    %53 = tpu.matmul %51, %8, %cst_17 {dimension_numbers = #tpu.dot_dimension_numbers<[1], [0], [0], [1], [0, 0, 1, 1], [], []>} : vector<1x8xf32>, vector<8x32xf32>, vector<1x32xf32> -> vector<1x32xf32>
    %54 = vector.extract_strided_slice %12 {offsets = [2, 0], sizes = [1, 32], strides = [1, 1]} : vector<3x32xf32> to vector<1x32xf32>
    %55 = arith.addf %54, %53 : vector<1x32xf32>
    %56 = vector.extract_strided_slice %55 {offsets = [0, 0], sizes = [1, 24], strides = [1, 1]} : vector<1x32xf32> to vector<1x24xf32>
    %57 = arith.negf %56 : vector<1x24xf32>
    %58 = math.exp %57 : vector<1x24xf32>
    %cst_18 = arith.constant 1.000000e+00 : f32
    %59 = vector.broadcast %cst_18 : f32 to vector<1x24xf32>
    %60 = arith.addf %59, %58 : vector<1x24xf32>
    %61 = arith.divf %59, %60 : vector<1x24xf32>
    %62 = vector.extract_strided_slice %55 {offsets = [0, 24], sizes = [1, 8], strides = [1, 1]} : vector<1x32xf32> to vector<1x8xf32>
    %63 = math.tanh %62 : vector<1x8xf32>
    %64 = vector.extract_strided_slice %61 {offsets = [0, 0], sizes = [1, 8], strides = [1, 1]} : vector<1x24xf32> to vector<1x8xf32>
    %65 = vector.extract_strided_slice %61 {offsets = [0, 8], sizes = [1, 8], strides = [1, 1]} : vector<1x24xf32> to vector<1x8xf32>
    %66 = vector.extract_strided_slice %61 {offsets = [0, 16], sizes = [1, 8], strides = [1, 1]} : vector<1x24xf32> to vector<1x8xf32>
    %67 = arith.mulf %65, %49 : vector<1x8xf32>
    %68 = arith.mulf %64, %63 : vector<1x8xf32>
    %69 = arith.addf %67, %68 : vector<1x8xf32>
    %70 = math.tanh %69 : vector<1x8xf32>
    %71 = arith.mulf %66, %70 : vector<1x8xf32>
    %72 = vector.extract_strided_slice %71 {offsets = [0, 0], sizes = [1, 4], strides = [1, 1]} : vector<1x8xf32> to vector<1x4xf32>
    %73 = tpu.concatenate %32, %52, %72 in 0 : vector<1x4xf32>, vector<1x4xf32>, vector<1x4xf32> -> vector<3x4xf32>
    %c0_19 = arith.constant 0 : index
    %c0_20 = arith.constant 0 : index
    %74 = vector.load %arg2[%c0_19, %c0_20] : memref<3x4xf32, #tpu.memory_space<vmem>>, vector<3x4xf32>
    tpu.vector_store %arg2[%c0_19, %c0_20], %73 {strides = array<i32>} : memref<3x4xf32, #tpu.memory_space<vmem>>, vector<3x4xf32>,
    return
  }
}

</mosaic_0001>

<bundles_post_ra>
// kernel: module0_forward.1
= control target key start
LH: loop header
LB: loop body
LE: loop exit
PB: predicated region body
PF: predicated region fallthrough
CT: control target
= control target key end

     0   :  { %7 = vsyncpa [#allocation3], 0  ;;  %s656_s0 = inlined_call_operand.hbm [shape: f32[2,3,16,16], index: 0, kind: input, shape index: {}]   ;;  %s657_s1 = inlined_call_operand.hbm [shape: f32[24,32], index: 1, kind: input, shape index: {}]   ;;  %s658_s2 = inlined_call_operand.vmem [shape: f32[3,4], index: 2, kind: output, shape index: {}]  }
   0x1   :  { %8 = vsyncpa [#allocation5], 0  ;;  %s579_s9 = smov [#allocation2]   ;;  %s531_s13 = scalar_lea.hbm %s656_s0, 1536 }
   0x2   :  { %s14_s10 = sshll.u32 %s579_s9, 4  ;;  %p532_p0 = scmp.ne.s32.totalorder %s656_s0, %s531_s13  ;;  %s15_s10 = int_to_ptr.vmem [resolvable:$true] %s14_s10 }
   0x3   :  { %p535_p1 = scmp.lt.u32.totalorder %s531_s13, %s656_s0 }
   0x5   :  { %p537_p2 = pnand %p535_p1, %p532_p0 }
   0x7   :  { %540 = shalt.err (!%p537_p2)
}
   0x8   :  { %s541_s18 = scalar_lea.vmem %s15_s10, 1536  ;;  %p546_p4 = scmp.lt.s32.totalorder %s15_s10, %s15_s10 }
   0x9   :  { %p542_p3 = scmp.ne.s32.totalorder %s15_s10, %s541_s18  ;;  %p547_p5 = scmp.lt.s32.totalorder %s541_s18, %s541_s18 }
   0xb   :  { %p548_p6 = por %p547_p5, %p546_p4 }
   0xd   :  { %p549_p7 = pnand %p548_p6, %p542_p3 }
   0xf   :  { %552 = shalt.err (!%p549_p7)
}
  0x10   :  { %s580_s19 = smov 128   ;;  %s581_s20 = smov 8  }
  0x11   :  { %20 = dma.hbm_to_vmem [thread:$0]  %s656_s0, 1536, %s15_s10, [#allocation3], %s580_s19, %s580_s19, %s581_s20  }
  0x12   :  { %s582_s23 = smov [#allocation4]   ;;  %s553_s27 = scalar_lea.hbm %s657_s1, 384 }
  0x13   :  { %s26_s24 = sshll.u32 %s582_s23, 4  ;;  %p554_p8 = scmp.ne.s32.totalorder %s657_s1, %s553_s27  ;;  %s27_s24 = int_to_ptr.vmem [resolvable:$true] %s26_s24 }
  0x14   :  { %p557_p9 = scmp.lt.u32.totalorder %s553_s27, %s657_s1 }
  0x16   :  { %p559_p10 = pnand %p557_p9, %p554_p8 }
  0x18   :  { %562 = shalt.err (!%p559_p10)
}
  0x19   :  { %s563_s4 = scalar_lea.vmem %s27_s24, 384  ;;  %p568_p12 = scmp.lt.s32.totalorder %s27_s24, %s27_s24 }
  0x1a   :  { %p564_p11 = scmp.ne.s32.totalorder %s27_s24, %s563_s4  ;;  %p569_p13 = scmp.lt.s32.totalorder %s563_s4, %s563_s4 }
  0x1c   :  { %p570_p0 = por %p569_p13, %p568_p12 }
  0x1e   :  { %p571_p1 = pnand %p570_p0, %p564_p11 }
  0x20   :  { %574 = shalt.err (!%p571_p1)
}
  0x21   :  { %32 = dma.hbm_to_vmem [thread:$0]  %s657_s1, 384, %s27_s24, [#allocation5], %s580_s19, %s580_s19, %s581_s20  }
  0x22   :  { %575 = dma.done.wait [#allocation3], 1536  }
  0x23   :  { %576 = vsyncadd [#allocation3], 4294965760 }
  0x24   :  { %577 = dma.done.wait [#allocation5], 384  }
  0x25   :  { %578 = vsyncadd [#allocation5], 4294966912  ;;  %v583_v0 = vmov 0.0   ;;  %vm584_vm0 = vmmov 0   ;;  %vm50_vm1 = vcmask 1040384   ;;  %v54_v1 = vld [vmem:[#allocation4] sm:$0xff] }
  0x26   :  { %479 = vmatprep.subr.mxu0 %v583_v0  ;;  %481 = vmatprep.mubr.msk.f32.mxu0 %vm584_vm0, %v583_v0  ;;  %v39_v2 = vld [vmem:[#allocation2] sm:$0x1]  ;;  %v41_v3 = vld [vmem:[#allocation2 + $0x10] sm:$0x1]  ;;  %vm61_vm2 = vcmask 64512   ;;  %vm52_vm3 = vcmask 1041408  }
  0x27   :  { %484 = vmatprep.subr.mxu1 %v583_v0  ;;  %486 = vmatprep.mubr.msk.f32.mxu1 %vm584_vm0, %v583_v0  ;;  %v43_v4 = vld [vmem:[#allocation2 + $0x20] sm:$0x1]  ;;  %v45_v5 = vrot.slane %v41_v3, 7  ;;  %v55_v6 = vld [vmem:[#allocation4 + $0x8] sm:$0xff]  ;;  %v463_v10 = vld [vmem:[#allocation4 + $0x10] ss:$0 sm:$0xff] }
  0x28   :  { %480 = vmatpush3.msra.mxu0 %v54_v1  ;;  %v48_v7 = vrot.slane %v43_v4, 6  ;;  %485 = vmatpush3.msra.mxu1 %v55_v6  ;;  %s585_s1 = smov 104   ;;  %s586_s6 = smov 112   ;;  %vm455_vm4 = vcmask 26624  }
  0x29   :  { %489 = vmatprep.subr.mxu0 %v583_v0  ;;  %v51_v8 = vsel %vm50_vm1, %v39_v2, %v45_v5  ;;  %487 = vmatmul.mubr.msk.f32.vlgmr.msra.gmra.mrb[0].mxu1 %vm61_vm2, %v39_v2 }
  0x2a   :  { %494 = vmatprep.subr.mxu1 %v583_v0  ;;  %v53_v9 = vsel %vm52_vm3, %v51_v8, %v48_v7  ;;  %496 = vmatprep.mubr.msk.f32.mxu1 %vm584_vm0, %v583_v0 }
  0x2b   :  { %495 = vmatpush3.msra.mxu1 %v55_v6  ;;  %482 = vmatmul.mubr.msk.f32.vlgmr.msra.gmra.mrb[0].mxu0 %vm61_vm2, %v53_v9 }
  0x2c   :  { %490 = vmatpush3.msra.mxu0 %v55_v6  ;;  %491 = vmatprep.mubr.msk.f32.mxu0 %vm584_vm0, %v583_v0 }
  0xfc   :  { %v204_v11 = vpop.f32.mrb[0].mxu1 }
  0xfd   :  { %v488_v12 = vpop.f32.mrb[1].mxu1 }
  0xfe   :  { %v131_v13 = vpop.f32.mrb[0].mxu0 }
  0xff   :  { %v132_v14 = vadd.f32 %v463_v10, %v131_v13  ;;  %v483_v15 = vpop.f32.mrb[1].mxu0 }
 0x101   :  { %v208_v16 = vadd.f32 %v204_v11, %v132_v14 }
 0x103   :  { %507 = vtanh.f32 %v208_v16  ;;  %v466_v18 = vmul.f32 -1.442695, %v208_v16 }
 0x105   :  { %509 = vpow2.f32 %v466_v18 }
 0x10d   :  { %v508_v17 = vpop.eup %507 }
 0x10e   :  { %221 = vrot.lane.b32.xlu0 %v508_v17, %s585_s1 }
 0x10f   :  { %v510_v19 = vpop.eup %509 }
 0x110   :  { %v212_v20 = vadd.f32 1.0, %v510_v19 }
 0x112   :  { %216 = vrot.lane.b32.xlu0 %v41_v3, %s581_s20  ;;  %511 = vrcp.f32 %v212_v20 }
 0x11c   :  { %v512_v21 = vpop.eup %511 }
 0x180   :  { %v222_v22 = vpop.permute.xlu0 %221 }
 0x181   :  { %v224_v23 = vmul.f32 %v512_v21, %v222_v22 }
 0x183   :  { %226 = vrot.lane.b32.xlu1 %v224_v23, %s581_s20 }
 0x184   :  { %v217_v24 = vpop.permute.xlu0 %216 }
 0x185   :  { %v219_v25 = vmul.f32 %v512_v21, %v217_v24 }
 0x1f5   :  { %v227_v26 = vpop.permute.xlu1 %226 }
 0x1f6   :  { %v229_v27 = vadd.f32 %v227_v26, %v219_v25 }
 0x1f8   :  { %513 = vtanh.f32 %v229_v27  ;;  %v323_v43 = vrot.slane %v229_v27, 7 }
 0x202   :  { %v514_v28 = vpop.eup %513 }
 0x203   :  { %232 = vrot.lane.b32.xlu1 %v514_v28, %s581_s20 }
 0x275   :  { %v233_v29 = vpop.permute.xlu1 %232 }
 0x276   :  { %v235_v30 = vmul.f32 %v512_v21, %v233_v29 }
 0x278   :  { %237 = vrot.lane.b32.xlu0 %v235_v30, %s586_s6 }
 0x2ea   :  { %v238_v31 = vpop.permute.xlu0 %237 }
 0x2eb   :  { %492 = vmatmul.mubr.msk.f32.vlgmr.msra.gmra.mrb[2].mxu0 %vm61_vm2, %v238_v31 }
 0x3be   :  { %v307_v32 = vpop.f32.mrb[2].mxu0 }
 0x3bf   :  { %v312_v33 = vrot.slane %v307_v32, 7  ;;  %v493_v34 = vpop.f32.mrb[3].mxu0 }
 0x3c1   :  { %v314_v35 = vadd.f32 %v312_v33, %v132_v14 }
 0x3c3   :  { %515 = vtanh.f32 %v314_v35  ;;  %v468_v37 = vmul.f32 -1.442695, %v314_v35 }
 0x3c5   :  { %517 = vpow2.f32 %v468_v37 }
 0x3cd   :  { %v516_v36 = vpop.eup %515 }
 0x3ce   :  { %327 = vrot.lane.b32.xlu1 %v516_v36, %s585_s1 }
 0x3cf   :  { %v518_v38 = vpop.eup %517 }
 0x3d0   :  { %v318_v39 = vadd.f32 1.0, %v518_v38 }
 0x3d2   :  { %519 = vrcp.f32 %v318_v39 }
 0x3dc   :  { %v520_v40 = vpop.eup %519 }
 0x3dd   :  { %v325_v44 = vmul.f32 %v520_v40, %v323_v43 }
 0x440   :  { %v328_v41 = vpop.permute.xlu1 %327 }
 0x441   :  { %v330_v42 = vmul.f32 %v520_v40, %v328_v41 }
 0x443   :  { %332 = vrot.lane.b32.xlu0 %v330_v42, %s581_s20 }
 0x4b5   :  { %v333_v45 = vpop.permute.xlu0 %332 }
 0x4b6   :  { %v335_v46 = vadd.f32 %v333_v45, %v325_v44 }
 0x4b8   :  { %521 = vtanh.f32 %v335_v46  ;;  %v430_v63 = vrot.slane %v335_v46, 7 }
 0x4c2   :  { %v522_v47 = vpop.eup %521 }
 0x4c3   :  { %338 = vrot.lane.b32.xlu1 %v522_v47, %s581_s20 }
 0x535   :  { %v339_v48 = vpop.permute.xlu1 %338 }
 0x536   :  { %v341_v49 = vmul.f32 %v520_v40, %v339_v48 }
 0x538   :  { %v343_v50 = vrot.slane %v341_v49, 1  ;;  %v449_v6 = vsel %vm50_vm1, %v235_v30, %v341_v49 }
 0x53a   :  { %344 = vrot.lane.b32.xlu0 %v343_v50, %s586_s6 }
 0x5ac   :  { %v345_v51 = vpop.permute.xlu0 %344 }
 0x5ad   :  { %497 = vmatmul.mubr.msk.f32.vlgmr.msra.gmra.mrb[2].mxu1 %vm61_vm2, %v345_v51 }
 0x680   :  { %v414_v52 = vpop.f32.mrb[2].mxu1 }
 0x681   :  { %v419_v53 = vrot.slane %v414_v52, 6  ;;  %v498_v54 = vpop.f32.mrb[3].mxu1 }
 0x683   :  { %v421_v55 = vadd.f32 %v419_v53, %v132_v14 }
 0x685   :  { %523 = vtanh.f32 %v421_v55  ;;  %v470_v57 = vmul.f32 -1.442695, %v421_v55 }
 0x687   :  { %525 = vpow2.f32 %v470_v57 }
 0x68f   :  { %v524_v56 = vpop.eup %523 }
 0x690   :  { %434 = vrot.lane.b32.xlu1 %v524_v56, %s585_s1 }
 0x691   :  { %v526_v58 = vpop.eup %525 }
 0x692   :  { %v425_v59 = vadd.f32 1.0, %v526_v58 }
 0x694   :  { %527 = vrcp.f32 %v425_v59 }
 0x69e   :  { %v528_v60 = vpop.eup %527 }
 0x69f   :  { %v432_v0 = vmul.f32 %v528_v60, %v430_v63 }
 0x702   :  { %v435_v61 = vpop.permute.xlu1 %434 }
 0x703   :  { %v437_v62 = vmul.f32 %v528_v60, %v435_v61 }
 0x705   :  { %439 = vrot.lane.b32.xlu0 %v437_v62, %s581_s20 }
 0x777   :  { %v440_v1 = vpop.permute.xlu0 %439 }
 0x778   :  { %v442_v2 = vadd.f32 %v440_v1, %v432_v0 }
 0x77a   :  { %529 = vtanh.f32 %v442_v2 }
 0x784   :  { %v530_v3 = vpop.eup %529 }
 0x785   :  { %445 = vrot.lane.b32.xlu1 %v530_v3, %s581_s20 }
 0x7f7   :  { %v446_v4 = vpop.permute.xlu1 %445 }
 0x7f8   :  { %v448_v5 = vmul.f32 %v528_v60, %v446_v4 }
 0x7fa   :  { %v450_v7 = vsel %vm52_vm3, %v449_v6, %v448_v5 }
 0x7fb   :  { %452 = vrot.lane.b32.xlu0 %v450_v7, %s586_s6 }
 0x86d   :  { %v453_v8 = vpop.permute.xlu0 %452 }
 0x86e   :  { %456 = vst.msk [vmem:[%s658_s2] sm:$0x7] %vm455_vm4, %v453_v8 }
 0x86f   :  { %461 = vsyncpa [#allocation3], 1 }
 0x870   :  { %462 = vsyncpa [#allocation5], 1 }

</bundles_post_ra>
